<compile_context>
chip_gen: v6e
topology: v6e:2x2x1
jax: 0.10.0
libtpu: 0.0.40
codegen_flags: <defaults>
</compile_context>

<pallas_src>
import functools

import jax
import jax.numpy as jnp
from jax import lax
from jax.experimental import pallas as pl
from jax.experimental.pallas import tpu as pltpu


def _mge_kernel(ids_ref, r_ref, w_ref, o_ref, *, tokens):
    # ids_ref: (T, PG)       int8/int16/int32 raw token ids (packed rows)
    # r_ref:   (PG, PGT)     f32 lane-repeat selector (R[g, c] = 1 iff c//tokens == g)
    # w_ref:   (PGT, P*dim)  f32 block-diagonal embedding table
    # o_ref:   (T, P*dim)    f32
    ids = ids_ref[...].astype(jnp.int32).astype(jnp.float32)             # (T, PG)
    # Lane-repeat each id `tokens` times via a tiny MXU matmul (avoids a
    # lane-dim-changing reshape): sel[r, c] = ids[r, c // tokens].
    sel = jnp.dot(ids, r_ref[...], preferred_element_type=jnp.float32)   # (T, PGT)
    pgt = sel.shape[-1]
    tvals = (lax.broadcasted_iota(jnp.int32, (1, pgt), 1) % tokens
             ).astype(jnp.float32)                                       # (1, PGT)
    onehot = (sel == tvals).astype(jnp.float32)                          # (T, PGT)
    # Single fused gather matmul + single lane-dense store.
    o_ref[...] = jnp.dot(onehot, w_ref[...], preferred_element_type=jnp.float32)


def _round_up(a, m):
    return -(-a // m) * m


def pick_pack(dim):
    """Smallest P such that P*dim is a multiple of 128 (lane-dense output)."""
    import math
    return 128 // math.gcd(dim, 128)


def build_packed_operands(tables, pack):
    """Hoisted out of the per-call path: depends only on `tables` (and pack).

    Returns:
      w: (PG*tokens, PG*dg) f32 block-diagonal table (PG = pack*G)
      r: (PG, PG*tokens)    f32 lane-repeat selector
    """
    G, tokens, dg = tables.shape
    PG = pack * G
    PGT = PG * tokens
    out_w = PG * dg
    blocks = jnp.tile(tables.astype(jnp.float32), (pack, 1, 1))      # (PG, tokens, dg)
    # Block-diagonal scatter (no PGx eye-einsum intermediate).
    w4 = jnp.zeros((PG, tokens, PG, dg), jnp.float32)
    idx = jnp.arange(PG)
    w4 = w4.at[idx, :, idx, :].set(blocks)
    w = w4.reshape(PGT, out_w)
    r = jnp.kron(jnp.eye(PG, dtype=jnp.float32),
                 jnp.ones((1, tokens), jnp.float32))                 # (PG, PGT)
    return w, r


def multi_group_embedding(x, w, r, *, tokens, groups, pack):
    """x: (B, S, G) int ids; w/r from build_packed_operands -> (B, S, dim) f32."""
    B, S, G = x.shape
    assert G == groups
    PG = pack * G
    PGT, out_w = w.shape
    assert PGT == PG * tokens
    dim = out_w // pack
    R = B * S

    # ---- tile sizing: pad instead of degrading pack / tile size -------------
    RP0 = -(-R // pack)                      # packed rows needed
    if RP0 >= 64:
        # cap at 512 (HBM-efficient) but guarantee >= 2 grid steps so the
        # "parallel" axis can shard across v7x's two TensorCores.
        row_tile = min(512, _round_up(-(-RP0 // 2), 32))
    else:
        row_tile = _round_up(RP0, 32)
    RP_pad = _round_up(RP0, row_tile)        # multiple of row_tile (and of 32)
    R_pad = RP_pad * pack
    grid = (RP_pad // row_tile,)

    # ---- narrow, raw ids (no baked offsets) ---------------------------------
    if tokens <= 127:
        id_dtype = jnp.int8
    elif tokens <= 32767:
        id_dtype = jnp.int16
    else:
        id_dtype = jnp.int32
    ids = x.reshape(R, G).astype(id_dtype)
    ids = jnp.pad(ids, ((0, R_pad - R), (0, 0)))   # padded ids = 0 (valid rows, sliced off below)
    ids = ids.reshape(RP_pad, PG)

    ids_bytes = ids.size * ids.dtype.itemsize
    cost = pl.CostEstimate(
        flops=2 * RP_pad * PGT * (out_w + PG),
        transcendentals=0,
        bytes_accessed=ids_bytes + w.size * 4 + r.size * 4 + RP_pad * out_w * 4,
    )

    kernel = functools.partial(_mge_kernel, tokens=tokens)

    out_packed = pl.pallas_call(
        kernel,
        out_shape=jax.ShapeDtypeStruct((RP_pad, out_w), jnp.float32),
        grid_spec=pltpu.PrefetchScalarGridSpec(
            num_scalar_prefetch=0,
            grid=grid,
            in_specs=[
                pl.BlockSpec((row_tile, PG), lambda i: (i, 0)),
                # Resident constants: single-buffer (constant index map).
                pl.BlockSpec((PG, PGT), lambda i: (0, 0),
                             pipeline_mode=pl.Buffered(1)),
                pl.BlockSpec((PGT, out_w), lambda i: (0, 0),
                             pipeline_mode=pl.Buffered(1)),
            ],
            out_specs=pl.BlockSpec((row_tile, out_w), lambda i: (i, 0)),
        ),
        compiler_params=pltpu.CompilerParams(
            dimension_semantics=("parallel",)),
        cost_estimate=cost,
    )(ids, r, w)

    # Packed rows are consecutive original rows, so this reshape is exact.
    return out_packed.reshape(RP_pad * pack, dim)[:R].reshape(B, S, dim)


def reference(x, tables):
    # pure-JAX reference: per-group gather + concat on last axis
    G = tables.shape[0]
    chunks = [tables[g][x[:, :, g]] for g in range(G)]
    return jnp.concatenate(chunks, axis=-1)


if __name__ == "__main__":
    # Module config: MultiGroupEmbedding(tokens=16, groups=4, dim=32) -> dg=8
    tokens, groups, dim = 16, 4, 32
    dg = dim // groups
    B, S = 2, 8

    key = jax.random.PRNGKey(0)
    k_tab, k_ids = jax.random.split(key)

    # Deterministic parameter init (one table per group, like nn.Embedding weight)
    tables = jax.random.normal(k_tab, (groups, tokens, dg), dtype=jnp.float32)
    # Token ids, shape (B, S, groups)
    x = jax.random.randint(k_ids, (B, S, groups), 0, tokens, dtype=jnp.int32)

    # Packed operands depend only on the parameters -> built once, reused.
    P = pick_pack(dim)
    w, r = build_packed_operands(tables, P)

    out = multi_group_embedding(x, w, r, tokens=tokens, groups=groups, pack=P)
    out = jax.block_until_ready(out)

    ref = reference(x, tables)
    assert out.shape == (B, S, dim), out.shape
    assert jnp.allclose(out, ref, atol=1e-5, rtol=1e-5), "mismatch vs reference"

    print("KERNEL_OK")
</pallas_src>

<mosaic_0001>
module attributes {stable_mosaic.version = 11 : i64} {
  func.func @_mge_kernel(%arg0: i32, %arg1: memref<32x16xi8, #tpu.memory_space<vmem>>, %arg2: memref<16x256xf32, #tpu.memory_space<vmem>>, %arg3: memref<256x128xf32, #tpu.memory_space<vmem>>, %arg4: memref<32x128xf32, #tpu.memory_space<vmem>>) attributes {dimension_semantics = [#tpu.dimension_semantics<parallel>], iteration_bounds = array<i64: 1>, scalar_prefetch = 0 : i64, scratch_operands = 0 : i64, tpu.core_type = #tpu.core_type<tc>, window_params = [{transform_indices = @transform_0, window_bounds = array<i64: 32, 16>}, {pipeline_mode = #tpu.pipeline_mode<synchronous>, transform_indices = @transform_1, window_bounds = array<i64: 16, 256>}, {pipeline_mode = #tpu.pipeline_mode<synchronous>, transform_indices = @transform_2, window_bounds = array<i64: 256, 128>}, {transform_indices = @transform_3, window_bounds = array<i64: 32, 128>}]} {
    %c0 = arith.constant 0 : index
    %c0_0 = arith.constant 0 : index
    %0 = vector.load %arg1[%c0, %c0_0] : memref<32x16xi8, #tpu.memory_space<vmem>>, vector<32x16xi8>
    %1 = arith.extsi %0 : vector<32x16xi8> to vector<32x16xi32>
    %2 = arith.sitofp %1 : vector<32x16xi32> to vector<32x16xf32>
    %c0_1 = arith.constant 0 : index
    %c0_2 = arith.constant 0 : index
    %3 = vector.load %arg2[%c0_1, %c0_2] : memref<16x256xf32, #tpu.memory_space<vmem>>, vector<16x256xf32>
    %cst = arith.constant dense<0.000000e+00> : vector<32x256xf32>
    %4 = tpu.matmul %2, %3, %cst {dimension_numbers = #tpu.dot_dimension_numbers<[1], [0], [0], [1], [0, 0, 1, 1], [], []>} : vector<32x16xf32>, vector<16x256xf32>, vector<32x256xf32> -> vector<32x256xf32>
    %5 = tpu.iota {dimensions = array<i32: 1>} : vector<1x256xi32>
    %c16_i32 = arith.constant 16 : i32
    %c0_i32 = arith.constant 0 : i32
    %6 = arith.cmpi eq, %c16_i32, %c0_i32 : i32
    %c1_i32 = arith.constant 1 : i32
    %7 = arith.select %6, %c1_i32, %c16_i32 : i32
    %8 = vector.broadcast %7 : i32 to vector<1x256xi32>
    %9 = arith.remsi %5, %8 : vector<1x256xi32>
    %c0_i32_3 = arith.constant 0 : i32
    %10 = vector.broadcast %c0_i32_3 : i32 to vector<1x256xi32>
    %11 = arith.cmpi ne, %9, %10 : vector<1x256xi32>
    %c0_i32_4 = arith.constant 0 : i32
    %12 = vector.broadcast %c0_i32_4 : i32 to vector<1x256xi32>
    %13 = arith.cmpi slt, %9, %12 : vector<1x256xi32>
    %c0_i32_5 = arith.constant 0 : i32
    %14 = arith.cmpi slt, %7, %c0_i32_5 : i32
    %15 = vector.broadcast %14 : i1 to vector<1x256xi1>
    %16 = vector.broadcast %15 : vector<1x256xi1> to vector<1x256xi1>
    %17 = arith.xori %13, %16 : vector<1x256xi1>
    %18 = arith.andi %17, %11 : vector<1x256xi1>
    %19 = vector.broadcast %7 : i32 to vector<1x256xi32>
    %20 = arith.addi %9, %19 : vector<1x256xi32>
    %21 = arith.select %18, %20, %9 : vector<1x256xi1>, vector<1x256xi32>
    %22 = arith.sitofp %21 : vector<1x256xi32> to vector<1x256xf32>
    %23 = vector.broadcast %22 : vector<1x256xf32> to vector<32x256xf32>
    %24 = arith.cmpf oeq, %4, %23 : vector<32x256xf32>
    %25 = arith.extui %24 : vector<32x256xi1> to vector<32x256xi32>
    %26 = arith.sitofp %25 : vector<32x256xi32> to vector<32x256xf32>
    %c0_6 = arith.constant 0 : index
    %c0_7 = arith.constant 0 : index
    %27 = vector.load %arg3[%c0_6, %c0_7] : memref<256x128xf32, #tpu.memory_space<vmem>>, vector<256x128xf32>
    %cst_8 = arith.constant dense<0.000000e+00> : vector<32x128xf32>
    %28 = tpu.matmul %26, %27, %cst_8 {dimension_numbers = #tpu.dot_dimension_numbers<[1], [0], [0], [1], [0, 0, 1, 1], [], []>} : vector<32x256xf32>, vector<256x128xf32>, vector<32x128xf32> -> vector<32x128xf32>
    %c0_9 = arith.constant 0 : index
    %c0_10 = arith.constant 0 : index
    %29 = vector.load %arg4[%c0_9, %c0_10] : memref<32x128xf32, #tpu.memory_space<vmem>>, vector<32x128xf32>
    tpu.vector_store %arg4[%c0_9, %c0_10], %28 {strides = array<i32>} : memref<32x128xf32, #tpu.memory_space<vmem>>, vector<32x128xf32>,
    return
  }
  func.func @transform_0(%arg0: i32) -> (i32, i32) {
    %c0_i32 = arith.constant 0 : i32
    %c0_i32_0 = arith.constant 0 : i32
    return %arg0, %c0_i32 : i32, i32
  }
  func.func @transform_1(%arg0: i32) -> (i32, i32) {
    %c0_i32 = arith.constant 0 : i32
    %c0_i32_0 = arith.constant 0 : i32
    %c0_i32_1 = arith.constant 0 : i32
    return %c0_i32, %c0_i32_0 : i32, i32
  }
  func.func @transform_2(%arg0: i32) -> (i32, i32) {
    %c0_i32 = arith.constant 0 : i32
    %c0_i32_0 = arith.constant 0 : i32
    %c0_i32_1 = arith.constant 0 : i32
    return %c0_i32, %c0_i32_0 : i32, i32
  }
  func.func @transform_3(%arg0: i32) -> (i32, i32) {
    %c0_i32 = arith.constant 0 : i32
    %c0_i32_0 = arith.constant 0 : i32
    return %arg0, %c0_i32 : i32, i32
  }
}

</mosaic_0001>

<bundles_post_ra>
// kernel: tpu_custom_call.1
= control target key start
LH: loop header
LB: loop body
LE: loop exit
PB: predicated region body
PF: predicated region fallthrough
CT: control target
= control target key end

     0   :  { %8 = vsyncpa [#allocation3], 0  ;;  %s572_s0 = inlined_call_operand.vmem [shape: s8[32,16], index: 0, kind: input, shape index: {}]   ;;  %s573_s1 = inlined_call_operand.hbm [shape: f32[16,256], index: 1, kind: input, shape index: {}]   ;;  %s574_s2 = inlined_call_operand.hbm [shape: f32[256,128], index: 2, kind: input, shape index: {}]   ;;  %s575_s3 = inlined_call_operand.hbm [shape: f32[32,128], index: 3, kind: output, shape index: {}]  }
   0x1   :  { %9 = vsyncpa [#allocation6], 0 }
   0x2   :  { %10 = vsyncpa [#allocation4], 0  ;;  %s521_s12 = smov [#allocation2]  }
   0x3   :  { %s18_s13 = sshll.u32 %s521_s12, 4  ;;  %s19_s13 = int_to_ptr.vmem [resolvable:$true] %s18_s13 }
   0x4   :  { %s463_s14 = scalar_lea.vmem %s19_s13, 512  ;;  %p468_p1 = scmp.lt.s32.totalorder %s19_s13, %s19_s13 }
   0x5   :  { %p464_p0 = scmp.ne.s32.totalorder %s19_s13, %s463_s14  ;;  %p469_p2 = scmp.lt.s32.totalorder %s463_s14, %s463_s14 }
   0x7   :  { %p470_p3 = por %p469_p2, %p468_p1 }
   0x9   :  { %p471_p4 = pnand %p470_p3, %p464_p0 }
   0xb   :  { %474 = shalt.err (!%p471_p4)
}
   0xc   :  { %s522_s15 = smov 256   ;;  %s523_s16 = smov 16  }
   0xd   :  { %24 = dma.hbm_to_vmem [thread:$0]  %s573_s1, 512, %s19_s13, [#allocation3], %s522_s15, %s522_s15, %s523_s16  }
   0xe   :  { %s524_s19 = smov [#allocation5]  }
   0xf   :  { %s30_s20 = sshll.u32 %s524_s19, 4  ;;  %s31_s20 = int_to_ptr.vmem [resolvable:$true] %s30_s20 }
  0x10   :  { %s483_s21 = scalar_lea.vmem %s31_s20, 4096  ;;  %p488_p6 = scmp.lt.s32.totalorder %s31_s20, %s31_s20 }
  0x11   :  { %p484_p5 = scmp.ne.s32.totalorder %s31_s20, %s483_s21  ;;  %p489_p7 = scmp.lt.s32.totalorder %s483_s21, %s483_s21 }
  0x13   :  { %p490_p8 = por %p489_p7, %p488_p6 }
  0x15   :  { %p491_p9 = pnand %p490_p8, %p484_p5 }
  0x17   :  { %494 = shalt.err (!%p491_p9)
}
  0x18   :  { %s525_s22 = smov 128   ;;  %s526_s23 = smov 8  }
  0x19   :  { %36 = dma.hbm_to_vmem [thread:$0]  %s574_s2, 4096, %s31_s20, [#allocation6], %s525_s22, %s525_s22, %s526_s23  }
  0x1a   :  { %515 = dma.done.wait [#allocation3], 512  }
  0x1b   :  { %516 = vsyncadd [#allocation3], 4294966784 }
  0x1c   :  { %517 = dma.done.wait [#allocation6], 4096  }
  0x1d   :  { %518 = vsyncadd [#allocation6], 4294963200  ;;  %v527_v0 = vmov 0.0   ;;  %v55_v1 = vld [vmem:[#allocation2 + $0x18] sm:$0xff]  ;;  %v54_v2 = vld [vmem:[#allocation2 + $0x10] sm:$0xff]  ;;  %vm56_vm0 = vcmask 130048   ;;  %v158_v46 = vlaneseq }
  0x1e   :  { %133 = vmatprep.mubr.f32.mxu0 %v527_v0  ;;  %v53_v3 = vld [vmem:[#allocation2 + $0x8] sm:$0xff]  ;;  %97 = vmatprep.subr.mxu0 %v55_v1  ;;  %v52_v4 = vld [vmem:[#allocation2] sm:$0xff]  ;;  %v242_v6 = vld [vmem:[#allocation5 + $0xf8] sm:$0xff]  ;;  %v528_v56 = vmov 1.0  }
  0x1f   :  { %v43_v5 = vld [vmem:[%s572_s0] sm:$0xff]  ;;  %98 = vmatpush1.msra.mxu0 %v54_v2  ;;  %v226_v9 = vld [vmem:[#allocation5 + $0x78] sm:$0xff]  ;;  %414 = vmatprep.subr.mxu1 %v242_v6  ;;  %v241_v10 = vld [vmem:[#allocation5 + $0xf0] sm:$0xff]  ;;  %v159_v47 = vand.u32 127, %v158_v46  ;;  %s529_s0 = smov [#allocation7]  }
  0x20   :  { %v44_v7 = vunpack.c.0.s8 %v43_v5  ;;  %v45_v8 = vunpack.c.1.s8 %v43_v5  ;;  %99 = vmatprep.subr.mxu0 %v53_v3  ;;  %430 = vmatpush3.msra.mxu1 %v226_v9  ;;  %v225_v12 = vld [vmem:[#allocation5 + $0x70] sm:$0xff]  ;;  %v240_v13 = vld [vmem:[#allocation5 + $0xe8] sm:$0xff]  ;;  %v46_v15 = vunpack.c.2.s8 %v43_v5  ;;  %v239_v17 = vld [vmem:[#allocation5 + $0xe0] sm:$0xff]  ;;  %v47_v19 = vunpack.c.3.s8 %v43_v5  ;;  %s337_s2 = sshll.u32 %s529_s0, 4  ;;  %s338_s2 = int_to_ptr.vmem [resolvable:$true] %s337_s2 }
  0x21   :  { %100 = vmatpush1.msra.mxu0 %v52_v4  ;;  %415 = vmatprep.subr.mxu1 %v241_v10  ;;  %v224_v16 = vld [vmem:[#allocation5 + $0x68] sm:$0xff]  ;;  %v223_v20 = vld [vmem:[#allocation5 + $0x60] sm:$0xff]  ;;  %v238_v21 = vld [vmem:[#allocation5 + $0xd8] sm:$0xff]  ;;  %v160_v48 = vadd.s32 128, %v159_v47  ;;  %v165_v50 = vand.u32 15, %v159_v47  ;;  %s495_s27 = scalar_lea.vmem %s338_s2, 512  ;;  %p500_p11 = scmp.lt.s32.totalorder %s338_s2, %s338_s2 }
  0x22   :  { %v48_v11 = vcvt.s32.f32 %v44_v7  ;;  %370 = vmatprep.subr.mxu0 %v242_v6  ;;  %431 = vmatpush3.msra.mxu1 %v225_v12  ;;  %v49_v14 = vcvt.s32.f32 %v45_v8  ;;  %v50_v18 = vcvt.s32.f32 %v46_v15  ;;  %v222_v22 = vld [vmem:[#allocation5 + $0x58] sm:$0xff]  ;;  %v237_v23 = vld [vmem:[#allocation5 + $0xd0] sm:$0xff]  ;;  %v51_v24 = vcvt.s32.f32 %v47_v19  ;;  %v236_v26 = vld [vmem:[#allocation5 + $0xc8] sm:$0xff]  ;;  %p496_p10 = scmp.ne.s32.totalorder %s338_s2, %s495_s27  ;;  %p501_p12 = scmp.lt.s32.totalorder %s495_s27, %s495_s27 }
  0x23   :  { %416 = vmatprep.subr.mxu1 %v240_v13  ;;  %v221_v25 = vld [vmem:[#allocation5 + $0x50] sm:$0xff]  ;;  %v220_v27 = vld [vmem:[#allocation5 + $0x48] sm:$0xff]  ;;  %v235_v28 = vld [vmem:[#allocation5 + $0xc0] sm:$0xff]  ;;  %v172_v49 = vand.u32 15, %v160_v48  ;;  %v185_v53 = vcvt.s32.f32 %v165_v50 }
  0x24   :  { %350 = vmatmul.mubr.msk.f32.vlgmr.msra.gmra.mxu0 %vm56_vm0, %v48_v11  ;;  %432 = vmatpush3.msra.mxu1 %v224_v16  ;;  %v219_v29 = vld [vmem:[#allocation5 + $0x40] sm:$0xff]  ;;  %v234_v30 = vld [vmem:[#allocation5 + $0xb8] sm:$0xff]  ;;  %v233_v32 = vld [vmem:[#allocation5 + $0xb0] sm:$0xff]  ;;  %p502_p13 = por %p501_p12, %p500_p11 }
  0x25   :  { %139 = vmatprep.mubr.f32.mxu0 %v527_v0  ;;  %371 = vmatpush3.msra.mxu0 %v226_v9  ;;  %v218_v31 = vld [vmem:[#allocation5 + $0x38] sm:$0xff]  ;;  %v217_v33 = vld [vmem:[#allocation5 + $0x30] sm:$0xff]  ;;  %v232_v34 = vld [vmem:[#allocation5 + $0xa8] sm:$0xff]  ;;  %v186_v51 = vcvt.s32.f32 %v172_v49 }
  0x26   :  { %372 = vmatprep.subr.mxu0 %v241_v10  ;;  %417 = vmatprep.subr.mxu1 %v239_v17  ;;  %v216_v35 = vld [vmem:[#allocation5 + $0x28] sm:$0xff]  ;;  %v231_v36 = vld [vmem:[#allocation5 + $0xa0] sm:$0xff]  ;;  %v230_v38 = vld [vmem:[#allocation5 + $0x98] sm:$0xff]  ;;  %p503_p0 = pnand %p502_p13, %p496_p10 }
  0x27   :  { %373 = vmatpush3.msra.mxu0 %v225_v12  ;;  %433 = vmatpush3.msra.mxu1 %v223_v20  ;;  %v215_v37 = vld [vmem:[#allocation5 + $0x20] sm:$0xff]  ;;  %v214_v39 = vld [vmem:[#allocation5 + $0x18] sm:$0xff]  ;;  %v229_v40 = vld [vmem:[#allocation5 + $0x90] sm:$0xff] }
  0x28   :  { %351 = vmatmul.mubr.msk.f32.gmra.mxu0 %vm56_vm0, %v49_v14  ;;  %374 = vmatprep.subr.mxu0 %v240_v13  ;;  %v213_v41 = vld [vmem:[#allocation5 + $0x10] sm:$0xff]  ;;  %v228_v42 = vld [vmem:[#allocation5 + $0x88] sm:$0xff]  ;;  %v227_v44 = vld [vmem:[#allocation5 + $0x80] sm:$0xff] }
  0x29   :  { %145 = vmatprep.mubr.f32.mxu0 %v527_v0  ;;  %375 = vmatpush3.msra.mxu0 %v224_v16  ;;  %v212_v43 = vld [vmem:[#allocation5 + $0x8] sm:$0xff]  ;;  %v211_v45 = vld [vmem:[#allocation5] sm:$0xff] }
  0x2a   :  { %376 = vmatprep.subr.mxu0 %v239_v17  ;;  %418 = vmatprep.subr.mxu1 %v238_v21 }
  0x2b   :  { %377 = vmatpush3.msra.mxu0 %v223_v20  ;;  %434 = vmatpush3.msra.mxu1 %v222_v22 }
  0x2c   :  { %352 = vmatmul.mubr.msk.f32.gmra.mxu0 %vm56_vm0, %v50_v18  ;;  %378 = vmatprep.subr.mxu0 %v238_v21 }
  0x2d   :  { %151 = vmatprep.mubr.f32.mxu0 %v527_v0  ;;  %379 = vmatpush3.msra.mxu0 %v222_v22 }
  0x2e   :  { %380 = vmatprep.subr.mxu0 %v237_v23  ;;  %419 = vmatprep.subr.mxu1 %v237_v23 }
  0x2f   :  { %381 = vmatpush3.msra.mxu0 %v221_v25  ;;  %435 = vmatpush3.msra.mxu1 %v221_v25 }
  0x30   :  { %353 = vmatmul.mubr.msk.f32.gmra.mxu0 %vm56_vm0, %v51_v24  ;;  %382 = vmatprep.subr.mxu0 %v236_v26 }
  0x31   :  { %383 = vmatpush3.msra.mxu0 %v220_v27  ;;  %420 = vmatprep.subr.mxu1 %v236_v26 }
  0x32   :  { %384 = vmatprep.subr.mxu0 %v235_v28  ;;  %436 = vmatpush3.msra.mxu1 %v220_v27 }
  0x33   :  { %385 = vmatpush3.msra.mxu0 %v219_v29  ;;  %421 = vmatprep.subr.mxu1 %v235_v28 }
  0x34   :  { %386 = vmatprep.subr.mxu0 %v234_v30  ;;  %437 = vmatpush3.msra.mxu1 %v219_v29 }
  0x35   :  { %387 = vmatpush3.msra.mxu0 %v218_v31  ;;  %422 = vmatprep.subr.mxu1 %v234_v30 }
  0x36   :  { %388 = vmatprep.subr.mxu0 %v233_v32  ;;  %438 = vmatpush3.msra.mxu1 %v218_v31 }
  0x37   :  { %389 = vmatpush3.msra.mxu0 %v217_v33  ;;  %423 = vmatprep.subr.mxu1 %v233_v32 }
  0x38   :  { %390 = vmatprep.subr.mxu0 %v232_v34  ;;  %439 = vmatpush3.msra.mxu1 %v217_v33 }
  0x39   :  { %391 = vmatpush3.msra.mxu0 %v216_v35  ;;  %424 = vmatprep.subr.mxu1 %v232_v34 }
  0x3a   :  { %392 = vmatprep.subr.mxu0 %v231_v36  ;;  %440 = vmatpush3.msra.mxu1 %v216_v35 }
  0x3b   :  { %393 = vmatpush3.msra.mxu0 %v215_v37  ;;  %425 = vmatprep.subr.mxu1 %v231_v36 }
  0x3c   :  { %394 = vmatprep.subr.mxu0 %v230_v38  ;;  %441 = vmatpush3.msra.mxu1 %v215_v37 }
  0x3d   :  { %395 = vmatpush3.msra.mxu0 %v214_v39  ;;  %426 = vmatprep.subr.mxu1 %v230_v38 }
  0x3e   :  { %396 = vmatprep.subr.mxu0 %v229_v40  ;;  %442 = vmatpush3.msra.mxu1 %v214_v39 }
  0x3f   :  { %427 = vmatprep.subr.mxu1 %v229_v40  ;;  %397 = vmatpush3.msra.mxu0 %v213_v41 }
  0x40   :  { %443 = vmatpush3.msra.mxu1 %v213_v41  ;;  %398 = vmatprep.subr.mxu0 %v228_v42 }
  0x41   :  { %428 = vmatprep.subr.mxu1 %v228_v42  ;;  %399 = vmatpush3.msra.mxu0 %v212_v43 }
  0x42   :  { %444 = vmatpush3.msra.mxu1 %v212_v43  ;;  %400 = vmatprep.subr.mxu0 %v227_v44 }
  0x43   :  { %429 = vmatprep.subr.mxu1 %v227_v44  ;;  %401 = vmatpush3.msra.mxu0 %v211_v45 }
  0x44   :  { %445 = vmatpush3.msra.mxu1 %v211_v45 }
  0xe4   :  { %v135_v52 = vpop.f32.mrf.mxu0 }
  0xe5   :  { %vm187_vm2 = vcmp.eq.f32.partialorder %v135_v52, %v185_v53 }
  0xe6   :  { %v137_v54 = vpop.f32.mrf.mxu0 }
  0xe7   :  { %vm188_vm1 = vcmp.eq.f32.partialorder %v137_v54, %v186_v51 }
  0xe8   :  { %v141_v55 = vpop.f32.mrf.mxu0  ;;  %362 = vmatprep.mubr.msk.f32.mxu0 %vm188_vm1, %v528_v56 }
  0xe9   :  { %363 = vmatmul.mubr.msk.f32.vlgmr.msra.gmra.mxu0 %vm187_vm2, %v528_v56  ;;  %vm189_vm4 = vcmp.eq.f32.partialorder %v141_v55, %v185_v53 }
  0xea   :  { %v143_v57 = vpop.f32.mrf.mxu0 }
  0xeb   :  { %vm190_vm3 = vcmp.eq.f32.partialorder %v143_v57, %v186_v51 }
  0xec   :  { %v147_v58 = vpop.f32.mrf.mxu0  ;;  %364 = vmatprep.mubr.msk.f32.mxu1 %vm190_vm3, %v528_v56 }
  0xed   :  { %365 = vmatmul.mubr.msk.f32.vlgmr.msra.gmra.mxu1 %vm189_vm4, %v528_v56  ;;  %vm191_vm6 = vcmp.eq.f32.partialorder %v147_v58, %v185_v53 }
  0xee   :  { %v149_v59 = vpop.f32.mrf.mxu0 }
  0xef   :  { %vm192_vm5 = vcmp.eq.f32.partialorder %v149_v59, %v186_v51 }
  0xf0   :  { %v153_v60 = vpop.f32.mrf.mxu0  ;;  %366 = vmatprep.mubr.msk.f32.mxu1 %vm192_vm5, %v528_v56 }
  0xf1   :  { %367 = vmatmul.mubr.msk.f32.gmra.mxu1 %vm191_vm6, %v528_v56  ;;  %vm193_vm8 = vcmp.eq.f32.partialorder %v153_v60, %v185_v53 }
  0xf2   :  { %v155_v61 = vpop.f32.mrf.mxu0 }
  0xf3   :  { %vm194_vm7 = vcmp.eq.f32.partialorder %v155_v61, %v186_v51 }
  0xf4   :  { %368 = vmatprep.mubr.msk.f32.mxu1 %vm194_vm7, %v528_v56 }
  0xf5   :  { %369 = vmatmul.mubr.msk.f32.gmra.mxu1 %vm193_vm8, %v528_v56 }
 0x1a9   :  { %v402_v62 = vpop.f32.mrf.mxu0 }
 0x1ab   :  { %v403_v63 = vpop.f32.mrf.mxu0 }
 0x1ac   :  { %v404_v0 = vadd.f32 %v403_v63, %v402_v62 }
 0x1ad   :  { %v405_v1 = vpop.f32.mrf.mxu1 }
 0x1ae   :  { %328 = vst [vmem:[#allocation7] sm:$0xff] %v404_v0 }
 0x1af   :  { %v406_v2 = vpop.f32.mrf.mxu1 }
 0x1b0   :  { %v407_v3 = vadd.f32 %v406_v2, %v405_v1 }
 0x1b1   :  { %v408_v4 = vpop.f32.mrf.mxu1 }
 0x1b2   :  { %329 = vst [vmem:[#allocation7 + $0x8] sm:$0xff] %v407_v3 }
 0x1b3   :  { %v409_v5 = vpop.f32.mrf.mxu1 }
 0x1b4   :  { %v410_v6 = vadd.f32 %v409_v5, %v408_v4 }
 0x1b5   :  { %v411_v7 = vpop.f32.mrf.mxu1 }
 0x1b6   :  { %330 = vst [vmem:[#allocation7 + $0x10] sm:$0xff] %v410_v6 }
 0x1b7   :  { %v412_v8 = vpop.f32.mrf.mxu1 }
 0x1b8   :  { %v413_v9 = vadd.f32 %v412_v8, %v411_v7 }
 0x1ba   :  { %331 = vst [vmem:[#allocation7 + $0x18] sm:$0xff] %v413_v9 }
 0x1bb   :  { %506 = shalt.err (!%p503_p0)
}
 0x1bc   :  { %343 = dma.vmem_to_hbm [thread:$0]  %s338_s2, 512, %s575_s3, [#allocation4], %s525_s22, %s525_s22, %s526_s23  }
 0x1bd   :  { %519 = dma.done.wait [#allocation4], 512  }
 0x1be   :  { %520 = vsyncadd [#allocation4], 4294966784 }
 0x1bf   :  { %347 = vsyncpa [#allocation3], 1 }
 0x1c0   :  { %348 = vsyncpa [#allocation6], 1 }
 0x1c1   :  { %349 = vsyncpa [#allocation4], 1 }

</bundles_post_ra>
